<compile_context>
chip_gen: v6e
topology: v6e:2x2x1
jax: 0.10.0
libtpu: 0.0.40
codegen_flags: <defaults>
</compile_context>

<pallas_src>
import functools

import jax
import jax.numpy as jnp
from jax.experimental import pallas as pl
from jax.experimental.pallas import tpu as pltpu


def dqn_kernel(x_ref, w1_ref, b1_ref, w2_ref, b2_ref, o_ref):
    # x_ref:  (6, TB)   activations, batch on lanes
    # w1_ref: (12, 6)   b1_ref: (12, 1)
    # w2_ref: (2, 12)   b2_ref: (2, 1)
    # o_ref:  (2, TB)
    x = x_ref[...]
    h = jnp.dot(w1_ref[...], x, preferred_element_type=jnp.float32)   # (12, TB)
    h = jnp.maximum(h + b1_ref[...], 0.0)                             # ReLU
    y = jnp.dot(w2_ref[...], h, preferred_element_type=jnp.float32)   # (2, TB)
    o_ref[...] = (y + b2_ref[...]).astype(o_ref.dtype)


def _round_up(n, m):
    return ((n + m - 1) // m) * m


def _dqn_pallas(x, w1, b1, w2, b2, tile_batch):
    """x: (B, 6) f32; w1: (12, 6); b1: (12,); w2: (2, 12); b2: (2,)."""
    B = x.shape[0]
    in_f = w1.shape[1]    # 6
    hid = w1.shape[0]     # 12
    out_f = w2.shape[0]   # 2

    # Batch tile: multiple of 128 lanes; shrink for small batches.
    TB = max(128, min(_round_up(tile_batch, 128), _round_up(B, 128)))
    B_pad = _round_up(B, TB)
    n_tiles = B_pad // TB

    # One-time wrapper-side layout change: (B, 6) -> (6, B_pad), batch on lanes.
    x_t = jnp.pad(jnp.transpose(x), ((0, 0), (0, B_pad - B)))
    b1_col = b1.reshape(hid, 1)
    b2_col = b2.reshape(out_f, 1)

    flops = 2 * B_pad * (in_f * hid + hid * out_f)
    bytes_accessed = (
        B_pad * (in_f + out_f) * 4
        + (hid * in_f + hid + out_f * hid + out_f) * 4
    )

    out_t = pl.pallas_call(
        dqn_kernel,
        out_shape=jax.ShapeDtypeStruct((out_f, B_pad), x.dtype),
        grid=(n_tiles,),
        in_specs=[
            pl.BlockSpec((in_f, TB), lambda i: (0, i)),        # x tile
            pl.BlockSpec((hid, in_f), lambda i: (0, 0)),       # W1 resident
            pl.BlockSpec((hid, 1), lambda i: (0, 0)),          # b1 resident
            pl.BlockSpec((out_f, hid), lambda i: (0, 0)),      # W2 resident
            pl.BlockSpec((out_f, 1), lambda i: (0, 0)),        # b2 resident
        ],
        out_specs=pl.BlockSpec((out_f, TB), lambda i: (0, i)),
        compiler_params=pltpu.CompilerParams(
            dimension_semantics=("parallel",),
            vmem_limit_bytes=32 * 1024 * 1024,
        ),
        cost_estimate=pl.CostEstimate(
            flops=flops, transcendentals=0, bytes_accessed=bytes_accessed),
    )(x_t, w1, b1_col, w2, b2_col)

    # Back to the PyTorch (B, 2) convention.
    return jnp.transpose(out_t[:, :B])


def base_dqn_forward(x, w1, b1, w2, b2, *, tile_batch=512, use_pallas=None):
    """Forward pass of BaseDQN: relu(x @ W1^T + b1) @ W2^T + b2.

    x: (B, 6); w1: (12, 6); b1: (12,); w2: (2, 12); b2: (2,) -- PyTorch layout.
    """
    B = x.shape[0]
    if use_pallas is None:
        # Tiny batches: fixed ~0.35 us/step grid + launch overhead dwarfs the
        # work; let XLA fuse the whole thing.  Pallas path pays off once the
        # batch is HBM-roofline-scale.
        use_pallas = B >= 256
    if not use_pallas:
        return jnp.maximum(x @ w1.T + b1, 0.0) @ w2.T + b2
    return _dqn_pallas(x, w1, b1, w2, b2, tile_batch)


def init_params(key):
    """Mirror PyTorch nn.Linear defaults: U(-1/sqrt(fan_in), 1/sqrt(fan_in)),
    weights stored as (out_features, in_features)."""
    k1, k2, k3, k4 = jax.random.split(key, 4)
    bound1 = 1.0 / jnp.sqrt(6.0)
    bound2 = 1.0 / jnp.sqrt(12.0)
    w1 = jax.random.uniform(k1, (12, 6), jnp.float32, -bound1, bound1)
    b1 = jax.random.uniform(k2, (12,), jnp.float32, -bound1, bound1)
    w2 = jax.random.uniform(k3, (2, 12), jnp.float32, -bound2, bound2)
    b2 = jax.random.uniform(k4, (2,), jnp.float32, -bound2, bound2)
    return w1, b1, w2, b2


def _reference(x, w1, b1, w2, b2):
    return jnp.maximum(x @ w1.T + b1, 0.0) @ w2.T + b2


if __name__ == "__main__":
    key = jax.random.PRNGKey(0)
    pkey, xkey1, xkey2 = jax.random.split(key, 3)
    w1, b1, w2, b2 = init_params(pkey)

    # Small batch consistent with the module; force the Pallas path so the
    # kernel itself is exercised (single 128-lane tile, grid=(1,)).
    x_small = jax.random.normal(xkey1, (8, 6), jnp.float32)
    out_small = jax.block_until_ready(
        base_dqn_forward(x_small, w1, b1, w2, b2, use_pallas=True))
    assert out_small.shape == (8, 2)
    assert jnp.allclose(out_small, _reference(x_small, w1, b1, w2, b2),
                        atol=1e-5, rtol=1e-5)

    # Multi-tile batch: 300 rows with 128-row tiles -> 3 pipelined grid steps.
    x_big = jax.random.normal(xkey2, (300, 6), jnp.float32)
    out_big = jax.block_until_ready(
        base_dqn_forward(x_big, w1, b1, w2, b2, tile_batch=128,
                         use_pallas=True))
    assert out_big.shape == (300, 2)
    assert jnp.allclose(out_big, _reference(x_big, w1, b1, w2, b2),
                        atol=1e-5, rtol=1e-5)

    print("KERNEL_OK")
</pallas_src>

<mosaic_0001>
module attributes {stable_mosaic.version = 11 : i64} {
  func.func @dqn_kernel(%arg0: i32, %arg1: memref<6x128xf32, #tpu.memory_space<vmem>>, %arg2: memref<12x6xf32, #tpu.memory_space<vmem>>, %arg3: memref<12x1xf32, #tpu.memory_space<vmem>>, %arg4: memref<2x12xf32, #tpu.memory_space<vmem>>, %arg5: memref<2x1xf32, #tpu.memory_space<vmem>>, %arg6: memref<2x128xf32, #tpu.memory_space<vmem>>) attributes {dimension_semantics = [#tpu.dimension_semantics<parallel>], iteration_bounds = array<i64: 1>, scalar_prefetch = 0 : i64, scratch_operands = 0 : i64, tpu.core_type = #tpu.core_type<tc>, window_params = [{transform_indices = @transform_0, window_bounds = array<i64: 6, 128>}, {pipeline_mode = #tpu.pipeline_mode<synchronous>, transform_indices = @transform_1, window_bounds = array<i64: 12, 6>}, {pipeline_mode = #tpu.pipeline_mode<synchronous>, transform_indices = @transform_2, window_bounds = array<i64: 12, 1>}, {pipeline_mode = #tpu.pipeline_mode<synchronous>, transform_indices = @transform_3, window_bounds = array<i64: 2, 12>}, {pipeline_mode = #tpu.pipeline_mode<synchronous>, transform_indices = @transform_4, window_bounds = array<i64: 2, 1>}, {transform_indices = @transform_5, window_bounds = array<i64: 2, 128>}]} {
    %c0 = arith.constant 0 : index
    %c0_0 = arith.constant 0 : index
    %0 = vector.load %arg1[%c0, %c0_0] : memref<6x128xf32, #tpu.memory_space<vmem>>, vector<6x128xf32>
    %c0_1 = arith.constant 0 : index
    %c0_2 = arith.constant 0 : index
    %1 = vector.load %arg2[%c0_1, %c0_2] : memref<12x6xf32, #tpu.memory_space<vmem>>, vector<12x6xf32>
    %cst = arith.constant dense<0.000000e+00> : vector<12x128xf32>
    %2 = tpu.matmul %1, %0, %cst {dimension_numbers = #tpu.dot_dimension_numbers<[1], [0], [0], [1], [0, 0, 1, 1], [], []>} : vector<12x6xf32>, vector<6x128xf32>, vector<12x128xf32> -> vector<12x128xf32>
    %c0_3 = arith.constant 0 : index
    %c0_4 = arith.constant 0 : index
    %3 = vector.load %arg3[%c0_3, %c0_4] : memref<12x1xf32, #tpu.memory_space<vmem>>, vector<12x1xf32>
    %4 = vector.broadcast %3 : vector<12x1xf32> to vector<12x128xf32>
    %5 = arith.addf %2, %4 : vector<12x128xf32>
    %cst_5 = arith.constant 0.000000e+00 : f32
    %6 = vector.broadcast %cst_5 : f32 to vector<12x128xf32>
    %7 = arith.maximumf %5, %6 : vector<12x128xf32>
    %c0_6 = arith.constant 0 : index
    %c0_7 = arith.constant 0 : index
    %8 = vector.load %arg4[%c0_6, %c0_7] : memref<2x12xf32, #tpu.memory_space<vmem>>, vector<2x12xf32>
    %cst_8 = arith.constant dense<0.000000e+00> : vector<2x128xf32>
    %9 = tpu.matmul %8, %7, %cst_8 {dimension_numbers = #tpu.dot_dimension_numbers<[1], [0], [0], [1], [0, 0, 1, 1], [], []>} : vector<2x12xf32>, vector<12x128xf32>, vector<2x128xf32> -> vector<2x128xf32>
    %c0_9 = arith.constant 0 : index
    %c0_10 = arith.constant 0 : index
    %10 = vector.load %arg5[%c0_9, %c0_10] : memref<2x1xf32, #tpu.memory_space<vmem>>, vector<2x1xf32>
    %11 = vector.broadcast %10 : vector<2x1xf32> to vector<2x128xf32>
    %12 = arith.addf %9, %11 : vector<2x128xf32>
    %c0_11 = arith.constant 0 : index
    %c0_12 = arith.constant 0 : index
    %13 = vector.load %arg6[%c0_11, %c0_12] : memref<2x128xf32, #tpu.memory_space<vmem>>, vector<2x128xf32>
    tpu.vector_store %arg6[%c0_11, %c0_12], %12 {strides = array<i32>} : memref<2x128xf32, #tpu.memory_space<vmem>>, vector<2x128xf32>,
    return
  }
  func.func @transform_0(%arg0: i32) -> (i32, i32) {
    %c0_i32 = arith.constant 0 : i32
    %c0_i32_0 = arith.constant 0 : i32
    return %c0_i32, %arg0 : i32, i32
  }
  func.func @transform_1(%arg0: i32) -> (i32, i32) {
    %c0_i32 = arith.constant 0 : i32
    %c0_i32_0 = arith.constant 0 : i32
    %c0_i32_1 = arith.constant 0 : i32
    return %c0_i32, %c0_i32_0 : i32, i32
  }
  func.func @transform_2(%arg0: i32) -> (i32, i32) {
    %c0_i32 = arith.constant 0 : i32
    %c0_i32_0 = arith.constant 0 : i32
    %c0_i32_1 = arith.constant 0 : i32
    return %c0_i32, %c0_i32_0 : i32, i32
  }
  func.func @transform_3(%arg0: i32) -> (i32, i32) {
    %c0_i32 = arith.constant 0 : i32
    %c0_i32_0 = arith.constant 0 : i32
    %c0_i32_1 = arith.constant 0 : i32
    return %c0_i32, %c0_i32_0 : i32, i32
  }
  func.func @transform_4(%arg0: i32) -> (i32, i32) {
    %c0_i32 = arith.constant 0 : i32
    %c0_i32_0 = arith.constant 0 : i32
    %c0_i32_1 = arith.constant 0 : i32
    return %c0_i32, %c0_i32_0 : i32, i32
  }
  func.func @transform_5(%arg0: i32) -> (i32, i32) {
    %c0_i32 = arith.constant 0 : i32
    %c0_i32_0 = arith.constant 0 : i32
    return %c0_i32, %arg0 : i32, i32
  }
}

</mosaic_0001>

<bundles_post_ra>
// kernel: tpu_custom_call.1
= control target key start
LH: loop header
LB: loop body
LE: loop exit
PB: predicated region body
PF: predicated region fallthrough
CT: control target
= control target key end

     0   :  { %vm43_vm0 = vcmask 1045504   ;;  %vm36_vm1 = vcmask 48128   ;;  %v275_v4 = vmov 0   ;;  %s333_s0 = inlined_call_operand.vmem [shape: f32[6,128], index: 0, kind: input, shape index: {}]   ;;  %s334_s1 = inlined_call_operand.vmem [shape: f32[12,6], index: 1, kind: input, shape index: {}]   ;;  %s335_s2 = inlined_call_operand.vmem [shape: f32[12,1], index: 2, kind: input, shape index: {}]   ;;  %s336_s3 = inlined_call_operand.vmem [shape: f32[2,12], index: 3, kind: input, shape index: {}]   ;;  %s337_s4 = inlined_call_operand.vmem [shape: f32[2,1], index: 4, kind: input, shape index: {}]   ;;  %s338_s5 = inlined_call_operand.hbm [shape: f32[2,128], index: 5, kind: output, shape index: {}]  }
   0x1   :  { %v21_v0 = vld [vmem:[%s333_s0] sm:$0x3f]  ;;  %v23_v2 = vld [vmem:[%s334_s1 + $0x8] sm:$0xf]  ;;  %251 = vset.pattern.permute.xlu0 %v275_v4 }
   0x2   :  { %v22_v1 = vld [vmem:[%s334_s1] sm:$0xff]  ;;  %235 = vmatprep.subr.msk.mxu0 %vm43_vm0, %v21_v0  ;;  %v25_v3 = vld [vmem:[%s335_s2 + $0x8] sm:$0xf] }
   0x3   :  { %237 = vmatprep.mubr.msk.f32.mxu0 %vm36_vm1, %v22_v1  ;;  %236 = vmatpush3.msk.msra.mxu0 %vm43_vm0, %v21_v0 }
   0x4   :  { %10 = vsyncpa [#allocation3], 0  ;;  %238 = vmatmul.mubr.msk.f32.vlgmr.msra.gmra.mxu0 %vm36_vm1, %v23_v2  ;;  %33 = vperm.xlu0 %251, %v25_v3   ;;  %v24_v5 = vld [vmem:[%s335_s2] sm:$0xff]  ;;  %v276_v6 = vmov 0.0   ;;  %vm277_vm2 = vmmov 0   ;;  %vm135_vm3 = vcmask 1043456  }
   0x5   :  { %252 = vset.pattern.permute.xlu1 %v275_v4  ;;  %240 = vmatprep.subr.mxu1 %v276_v6  ;;  %v125_v7 = vld [vmem:[%s337_s4] sm:$0x3]  ;;  %vm131_vm4 = vcmask 97280   ;;  %s278_s4 = smov [#allocation2]  }
   0x6   :  { %244 = vmatprep.mubr.msk.f32.mxu1 %vm277_vm2, %v276_v6  ;;  %128 = vperm.xlu1 %252, %v125_v7   ;;  %v124_v16 = vld [vmem:[%s336_s3] sm:$0x3]  ;;  %s216_s29 = sshll.u32 %s278_s4, 4  ;;  %s217_s29 = int_to_ptr.vmem [resolvable:$true] %s216_s29 }
   0x7   :  { %s253_s30 = scalar_lea.vmem %s217_s29, 32  ;;  %p258_p1 = scmp.lt.s32.totalorder %s217_s29, %s217_s29 }
   0x8   :  { %28 = vperm.xlu0 %251, %v24_v5   ;;  %p254_p0 = scmp.ne.s32.totalorder %s217_s29, %s253_s30  ;;  %p259_p2 = scmp.lt.s32.totalorder %s253_s30, %s253_s30 }
   0xa   :  { %p260_p3 = por %p259_p2, %p258_p1 }
   0xc   :  { %p261_p4 = pnand %p260_p3, %p254_p0 }
  0x7f   :  { %v34_v8 = vpop.permute.xlu0 %33 }
  0x81   :  { %v129_v17 = vpop.permute.xlu1 %128 }
  0x83   :  { %v29_v11 = vpop.permute.xlu0 %28 }
  0xc4   :  { %v239_v9 = vpop.f32.mrf.mxu0 }
  0xc5   :  { %v119_v10 = vadd.f32 %v239_v9, %v34_v8 }
  0xc6   :  { %v113_v12 = vpop.f32.mrf.mxu0 }
  0xc7   :  { %v123_v13 = vmax.f32 %v119_v10, 0.0  ;;  %v114_v14 = vadd.f32 %v113_v12, %v29_v11 }
  0xc9   :  { %v122_v15 = vmax.f32 %v114_v14, 0.0  ;;  %241 = vmatpush3.msk.msra.mxu1 %vm135_vm3, %v123_v13 }
  0xca   :  { %242 = vmatprep.subr.mxu1 %v276_v6 }
  0xcb   :  { %243 = vmatpush3.msra.mxu1 %v122_v15 }
  0xcc   :  { %245 = vmatmul.mubr.msk.f32.vlgmr.msra.gmra.mxu1 %vm131_vm4, %v124_v16 }
 0x18c   :  { %v205_v18 = vpop.f32.mrf.mxu1 }
 0x18d   :  { %v206_v19 = vadd.f32 %v205_v18, %v129_v17 }
 0x18e   :  { %v246_v20 = vpop.f32.mrf.mxu1 }
 0x18f   :  { %209 = vst [vmem:[#allocation2] sm:$0x3] %v206_v19 }
 0x190   :  { %264 = shalt.err (!%p261_p4)
}
 0x191   :  { %219 = dma.vmem_to_hbm [thread:$0]  %s217_s29, 32, %s338_s5, [#allocation3]  }
 0x192   :  { %273 = dma.done.wait [#allocation3], 32  }
 0x193   :  { %274 = vsyncadd [#allocation3], 4294967264 }
 0x194   :  { %223 = vsyncpa [#allocation3], 1 }

</bundles_post_ra>
